<compile_context>
chip_gen: v7x
topology: tpu7x:2x2x1
jax: 0.10.0
libtpu: 0.0.40
codegen_flags: <defaults>
</compile_context>

<pallas_src>
import functools

import jax
import jax.numpy as jnp
from jax.experimental import pallas as pl
from jax.experimental.pallas import tpu as pltpu


def _embed_kernel(ids_ref, table_ref, out_ref, *, v_chunk, num_chunks, unroll):
    """One token tile: gather = sum over vocab chunks of one_hot(TB,Vc) @ table(Vc,D)."""
    ids = ids_ref[...]                                   # (TB, 1) int32, token ids
    tb = ids.shape[0]
    d = table_ref.shape[1]

    # Tiny (1, Vc) vocab-id row, built once (outside the loop; broadcasts are
    # not CSE'd) and broadcast against the (TB, 1) ids column -> (TB, Vc).
    col = jax.lax.broadcasted_iota(jnp.int32, (1, v_chunk), 1)

    def body(c, acc):
        start = pl.multiple_of(c * v_chunk, v_chunk)      # 128-aligned chunk start
        tab = table_ref[pl.ds(start, v_chunk), :]         # (Vc, D) table slice
        one_hot = (ids == (col + start)).astype(tab.dtype)  # (TB, Vc)   VPU
        # (TB, Vc) @ (Vc, D) -> (TB, D) on the MXU, f32 accumulation.
        return acc + jnp.dot(one_hot, tab, preferred_element_type=jnp.float32)

    acc = jax.lax.fori_loop(
        0, num_chunks, body, jnp.zeros((tb, d), jnp.float32), unroll=unroll
    )
    out_ref[...] = acc.astype(out_ref.dtype)


def word_feature_forward(x, table, *, token_tile=512, vocab_chunk=256):
    """Embedding lookup: x [bs, max_len] int -> [bs, max_len, D] in table.dtype.

    `table` is used in its natural (V, D) orientation (no pre-transpose needed).
    On v6e/v7x, pass `table` pre-cast to bfloat16 to halve its VMEM footprint
    and use the native bf16 MXU path (exact w.r.t. the stored bf16 weights).
    """
    bs, max_len = x.shape
    v, d = table.shape
    n = bs * max_len

    # Token tile: multiple of 128 (sublane alignment / MXU fill), no larger
    # than the 128-rounded token count for tiny inputs.
    token_tile = max(128, min(int(token_tile), pl.cdiv(n, 128) * 128))
    n_pad = pl.cdiv(n, token_tile) * token_tile

    # Vocab chunk for the in-kernel one-hot: bounds the live (TB, Vc)
    # intermediate (vreg/VMEM pressure) when V or token_tile grow.
    if v > vocab_chunk and v % vocab_chunk == 0 and vocab_chunk % 128 == 0:
        v_chunk = int(vocab_chunk)
    else:
        v_chunk = v  # single chunk (also covers V not divisible by the chunk)
    num_chunks = v // v_chunk

    ids = x.reshape(-1).astype(jnp.int32)
    if n_pad != n:
        ids = jnp.pad(ids, (0, n_pad - n))   # padded ids -> table row 0, sliced off below
    ids = ids.reshape(n_pad, 1)              # token axis on sublanes -> (TB, 1) blocks

    kernel = functools.partial(
        _embed_kernel,
        v_chunk=v_chunk,
        num_chunks=num_chunks,
        unroll=bool(num_chunks <= 8),
    )

    grid = (n_pad // token_tile,)

    # Explicit VMEM budget (blocks padded to (8, 128) tiles), with headroom;
    # the default scoped limit (16/32 MiB) is far below physical VMEM.
    def tile_bytes(rows, cols, itemsize):
        return (pl.cdiv(rows, 8) * 8) * (pl.cdiv(cols, 128) * 128) * itemsize

    tbytes = jnp.dtype(table.dtype).itemsize
    vmem_needed = (
        tile_bytes(v, d, tbytes)                     # resident table (1 buffer)
        + 2 * tile_bytes(token_tile, 1, 4)           # ids blocks (double buffered)
        + 2 * tile_bytes(token_tile, d, tbytes)      # out blocks (double buffered)
        + tile_bytes(token_tile, v_chunk, 4)         # one-hot chunk intermediate
        + tile_bytes(token_tile, d, 4)               # f32 accumulator
    )
    vmem_limit = int(min(max(2 * vmem_needed + (4 << 20), 8 << 20), 64 << 20))

    out_shape = jax.ShapeDtypeStruct((n_pad, d), table.dtype)
    ids_spec = pl.BlockSpec((token_tile, 1), lambda i: (i, 0))
    out_spec = pl.BlockSpec((token_tile, d), lambda i: (i, 0))
    compiler_params = pltpu.CompilerParams(
        dimension_semantics=("parallel",),           # token tiles independent -> megacore
        vmem_limit_bytes=vmem_limit,
    )

    def run(table_spec):
        return pl.pallas_call(
            kernel,
            out_shape=out_shape,
            grid_spec=pltpu.PrefetchScalarGridSpec(
                num_scalar_prefetch=0,
                grid=grid,
                in_specs=[ids_spec, table_spec],
                out_specs=out_spec,
            ),
            compiler_params=compiler_params,
        )(ids, table)

    # The table block index is grid-invariant, so the default double-buffer only
    # doubles resident VMEM; request a single buffer. Fall back to the default
    # spec if this Pallas build rejects single-buffering (pure perf knob).
    try:
        out = run(
            pl.BlockSpec((v, d), lambda i: (0, 0), pipeline_mode=pl.Buffered(1))
        )
    except Exception:
        out = run(pl.BlockSpec((v, d), lambda i: (0, 0)))

    if n_pad != n:
        out = out[:n]                        # drop padded tokens before reshaping
    return out.reshape(bs, max_len, d)       # free reshape: output is already row-major


if __name__ == "__main__":
    # Module config (synthetic, deterministic init - no checkpoint load).
    words_size = 256   # vocabulary size
    words_dim = 32     # embedding dim
    bs, max_len = 2, 8

    key = jax.random.PRNGKey(0)
    k_emb, k_ids = jax.random.split(key)

    # init_embedding-style uniform init: U(-sqrt(3/dim), sqrt(3/dim))
    bound = (3.0 / words_dim) ** 0.5
    table = jax.random.uniform(
        k_emb, (words_size, words_dim), minval=-bound, maxval=bound,
        dtype=jnp.float32,
    )
    x = jax.random.randint(k_ids, (bs, max_len), 0, words_size, dtype=jnp.int32)

    # vocab_chunk=128 exercises the multi-chunk accumulation path (2 chunks).
    out = word_feature_forward(x, table, token_tile=512, vocab_chunk=128)
    out = jax.block_until_ready(out)

    # Exact check vs plain JAX gather (f32 one-hot matmul selects exact rows).
    ref = jnp.take(table, x, axis=0)
    assert out.shape == (bs, max_len, words_dim)
    assert jnp.allclose(out, ref, atol=1e-6), "mismatch vs reference gather"

    print("KERNEL_OK")
</pallas_src>

<mosaic_0001>
module attributes {stable_mosaic.version = 11 : i64} {
  func.func @_embed_kernel(%arg0: i32, %arg1: memref<128x1xi32, #tpu.memory_space<vmem>>, %arg2: memref<256x32xf32, #tpu.memory_space<vmem>>, %arg3: memref<128x32xf32, #tpu.memory_space<vmem>>) attributes {dimension_semantics = [#tpu.dimension_semantics<parallel>], iteration_bounds = array<i64: 1>, scalar_prefetch = 0 : i64, scratch_operands = 0 : i64, tpu.core_type = #tpu.core_type<tc>, window_params = [{transform_indices = @transform_0, window_bounds = array<i64: 128, 1>}, {pipeline_mode = #tpu.pipeline_mode<synchronous>, transform_indices = @transform_1, window_bounds = array<i64: 256, 32>}, {transform_indices = @transform_2, window_bounds = array<i64: 128, 32>}]} {
    %c0 = arith.constant 0 : index
    %c0_0 = arith.constant 0 : index
    %0 = vector.load %arg1[%c0, %c0_0] : memref<128x1xi32, #tpu.memory_space<vmem>>, vector<128x1xi32>
    %1 = tpu.iota {dimensions = array<i32: 1>} : vector<1x128xi32>
    %cst = arith.constant 0.000000e+00 : f32
    %2 = vector.broadcast %cst : f32 to vector<128x32xf32>
    %c0_i32 = arith.constant 0 : i32
    %c128_i32 = arith.constant 128 : i32
    %3 = arith.muli %c0_i32, %c128_i32 : i32
    %4 = tpu.assume_multiple %3, 128 : i32
    %5 = arith.index_cast %4 : i32 to index
    %c0_1 = arith.constant 0 : index
    %6 = vector.load %arg2[%5, %c0_1] : memref<256x32xf32, #tpu.memory_space<vmem>>, vector<128x32xf32>
    %7 = vector.broadcast %4 : i32 to vector<1x128xi32>
    %8 = arith.addi %1, %7 : vector<1x128xi32>
    %9 = vector.broadcast %0 : vector<128x1xi32> to vector<128x128xi32>
    %10 = vector.broadcast %8 : vector<1x128xi32> to vector<128x128xi32>
    %11 = arith.cmpi eq, %9, %10 : vector<128x128xi32>
    %12 = arith.extui %11 : vector<128x128xi1> to vector<128x128xi32>
    %13 = arith.sitofp %12 : vector<128x128xi32> to vector<128x128xf32>
    %cst_2 = arith.constant dense<0.000000e+00> : vector<128x32xf32>
    %14 = tpu.matmul %13, %6, %cst_2 {dimension_numbers = #tpu.dot_dimension_numbers<[1], [0], [0], [1], [0, 0, 1, 1], [], []>} : vector<128x128xf32>, vector<128x32xf32>, vector<128x32xf32> -> vector<128x32xf32>
    %15 = arith.addf %2, %14 : vector<128x32xf32>
    %c1_i32 = arith.constant 1 : i32
    %c128_i32_3 = arith.constant 128 : i32
    %16 = arith.muli %c1_i32, %c128_i32_3 : i32
    %17 = tpu.assume_multiple %16, 128 : i32
    %18 = arith.index_cast %17 : i32 to index
    %c0_4 = arith.constant 0 : index
    %19 = vector.load %arg2[%18, %c0_4] : memref<256x32xf32, #tpu.memory_space<vmem>>, vector<128x32xf32>
    %20 = vector.broadcast %17 : i32 to vector<1x128xi32>
    %21 = arith.addi %1, %20 : vector<1x128xi32>
    %22 = vector.broadcast %0 : vector<128x1xi32> to vector<128x128xi32>
    %23 = vector.broadcast %21 : vector<1x128xi32> to vector<128x128xi32>
    %24 = arith.cmpi eq, %22, %23 : vector<128x128xi32>
    %25 = arith.extui %24 : vector<128x128xi1> to vector<128x128xi32>
    %26 = arith.sitofp %25 : vector<128x128xi32> to vector<128x128xf32>
    %cst_5 = arith.constant dense<0.000000e+00> : vector<128x32xf32>
    %27 = tpu.matmul %26, %19, %cst_5 {dimension_numbers = #tpu.dot_dimension_numbers<[1], [0], [0], [1], [0, 0, 1, 1], [], []>} : vector<128x128xf32>, vector<128x32xf32>, vector<128x32xf32> -> vector<128x32xf32>
    %28 = arith.addf %15, %27 : vector<128x32xf32>
    %c2_i32 = arith.constant 2 : i32
    %c0_6 = arith.constant 0 : index
    %c0_7 = arith.constant 0 : index
    %29 = vector.load %arg3[%c0_6, %c0_7] : memref<128x32xf32, #tpu.memory_space<vmem>>, vector<128x32xf32>
    tpu.vector_store %arg3[%c0_6, %c0_7], %28 {strides = array<i32>} : memref<128x32xf32, #tpu.memory_space<vmem>>, vector<128x32xf32>,
    return
  }
  func.func @transform_0(%arg0: i32) -> (i32, i32) {
    %c0_i32 = arith.constant 0 : i32
    %c0_i32_0 = arith.constant 0 : i32
    return %arg0, %c0_i32 : i32, i32
  }
  func.func @transform_1(%arg0: i32) -> (i32, i32) {
    %c0_i32 = arith.constant 0 : i32
    %c0_i32_0 = arith.constant 0 : i32
    %c0_i32_1 = arith.constant 0 : i32
    return %c0_i32, %c0_i32_0 : i32, i32
  }
  func.func @transform_2(%arg0: i32) -> (i32, i32) {
    %c0_i32 = arith.constant 0 : i32
    %c0_i32_0 = arith.constant 0 : i32
    return %arg0, %c0_i32 : i32, i32
  }
}

module attributes {stable_mosaic.version = 11 : i64} {
  func.func @_embed_kernel(%arg0: i32, %arg1: memref<128x1xi32, #tpu.memory_space<vmem>>, %arg2: memref<256x32xf32, #tpu.memory_space<vmem>>, %arg3: memref<128x32xf32, #tpu.memory_space<vmem>>) attributes {dimension_semantics = [#tpu.dimension_semantics<parallel>], iteration_bounds = array<i64: 1>, scalar_prefetch = 0 : i64, scratch_operands = 0 : i64, tpu.core_type = #tpu.core_type<tc>, window_params = [{transform_indices = @transform_0, window_bounds = array<i64: 128, 1>}, {pipeline_mode = #tpu.pipeline_mode<synchronous>, transform_indices = @transform_1, window_bounds = array<i64: 256, 32>}, {transform_indices = @transform_2, window_bounds = array<i64: 128, 32>}]} {
    %c0 = arith.constant 0 : index
    %c0_0 = arith.constant 0 : index
    %0 = vector.load %arg1[%c0, %c0_0] : memref<128x1xi32, #tpu.memory_space<vmem>>, vector<128x1xi32>
    %1 = tpu.iota {dimensions = array<i32: 1>} : vector<1x128xi32>
    %cst = arith.constant 0.000000e+00 : f32
    %2 = vector.broadcast %cst : f32 to vector<128x32xf32>
    %c0_i32 = arith.constant 0 : i32
    %c128_i32 = arith.constant 128 : i32
    %3 = arith.muli %c0_i32, %c128_i32 : i32
    %4 = tpu.assume_multiple %3, 128 : i32
    %5 = arith.index_cast %4 : i32 to index
    %c0_1 = arith.constant 0 : index
    %6 = vector.load %arg2[%5, %c0_1] : memref<256x32xf32, #tpu.memory_space<vmem>>, vector<128x32xf32>
    %7 = vector.broadcast %4 : i32 to vector<1x128xi32>
    %8 = arith.addi %1, %7 : vector<1x128xi32>
    %9 = vector.broadcast %0 : vector<128x1xi32> to vector<128x128xi32>
    %10 = vector.broadcast %8 : vector<1x128xi32> to vector<128x128xi32>
    %11 = arith.cmpi eq, %9, %10 : vector<128x128xi32>
    %12 = arith.extui %11 : vector<128x128xi1> to vector<128x128xi32>
    %13 = arith.sitofp %12 : vector<128x128xi32> to vector<128x128xf32>
    %cst_2 = arith.constant dense<0.000000e+00> : vector<128x32xf32>
    %14 = tpu.matmul %13, %6, %cst_2 {dimension_numbers = #tpu.dot_dimension_numbers<[1], [0], [0], [1], [0, 0, 1, 1], [], []>} : vector<128x128xf32>, vector<128x32xf32>, vector<128x32xf32> -> vector<128x32xf32>
    %15 = arith.addf %2, %14 : vector<128x32xf32>
    %c1_i32 = arith.constant 1 : i32
    %c128_i32_3 = arith.constant 128 : i32
    %16 = arith.muli %c1_i32, %c128_i32_3 : i32
    %17 = tpu.assume_multiple %16, 128 : i32
    %18 = arith.index_cast %17 : i32 to index
    %c0_4 = arith.constant 0 : index
    %19 = vector.load %arg2[%18, %c0_4] : memref<256x32xf32, #tpu.memory_space<vmem>>, vector<128x32xf32>
    %20 = vector.broadcast %17 : i32 to vector<1x128xi32>
    %21 = arith.addi %1, %20 : vector<1x128xi32>
    %22 = vector.broadcast %0 : vector<128x1xi32> to vector<128x128xi32>
    %23 = vector.broadcast %21 : vector<1x128xi32> to vector<128x128xi32>
    %24 = arith.cmpi eq, %22, %23 : vector<128x128xi32>
    %25 = arith.extui %24 : vector<128x128xi1> to vector<128x128xi32>
    %26 = arith.sitofp %25 : vector<128x128xi32> to vector<128x128xf32>
    %cst_5 = arith.constant dense<0.000000e+00> : vector<128x32xf32>
    %27 = tpu.matmul %26, %19, %cst_5 {dimension_numbers = #tpu.dot_dimension_numbers<[1], [0], [0], [1], [0, 0, 1, 1], [], []>} : vector<128x128xf32>, vector<128x32xf32>, vector<128x32xf32> -> vector<128x32xf32>
    %28 = arith.addf %15, %27 : vector<128x32xf32>
    %c2_i32 = arith.constant 2 : i32
    %c0_6 = arith.constant 0 : index
    %c0_7 = arith.constant 0 : index
    %29 = vector.load %arg3[%c0_6, %c0_7] : memref<128x32xf32, #tpu.memory_space<vmem>>, vector<128x32xf32>
    tpu.vector_store %arg3[%c0_6, %c0_7], %28 {strides = array<i32>} : memref<128x32xf32, #tpu.memory_space<vmem>>, vector<128x32xf32>,
    return
  }
  func.func @transform_0(%arg0: i32) -> (i32, i32) {
    %c0_i32 = arith.constant 0 : i32
    %c0_i32_0 = arith.constant 0 : i32
    return %arg0, %c0_i32 : i32, i32
  }
  func.func @transform_1(%arg0: i32) -> (i32, i32) {
    %c0_i32 = arith.constant 0 : i32
    %c0_i32_0 = arith.constant 0 : i32
    %c0_i32_1 = arith.constant 0 : i32
    return %c0_i32, %c0_i32_0 : i32, i32
  }
  func.func @transform_2(%arg0: i32) -> (i32, i32) {
    %c0_i32 = arith.constant 0 : i32
    %c0_i32_0 = arith.constant 0 : i32
    return %arg0, %c0_i32 : i32, i32
  }
}

</mosaic_0001>

<bundles_post_ra>
// kernel: tpu_custom_call.1
= control target key start
LH: loop header
LB: loop body
LE: loop exit
PB: predicated region body
PF: predicated region fallthrough
CT: control target
= control target key end

     0   :  { %v861_v0 = vmov 0   ;;  %s1155_s0 = inlined_call_operand.vmem [shape: s32[128,1], index: 0, kind: input, shape index: {}]   ;;  %s1156_s1 = inlined_call_operand.vmem [shape: f32[256,32], index: 1, kind: input, shape index: {}]   ;;  %s1157_s2 = inlined_call_operand.vmem [shape: f32[128,32], index: 2, kind: output, shape index: {}]  }
   0x1   :  { %860 = vset.pattern.permute.xlu1 %v861_v0  ;;  %859 = vset.pattern.permute.xlu0 %v861_v0  ;;  %v13_v1 = vld [vmem:[%s1155_s0 + $0x10] sm:$0xff]  ;;  %v11_v2 = vld [vmem:[%s1155_s0] sm:$0xff]  ;;  %v14_v3 = vld [vmem:[%s1155_s0 + $0x18] sm:$0xff] }
   0x2   :  { %54 = vperm.xlu1 %860, %v13_v1   ;;  %48 = vperm.xlu0 %859, %v11_v2   ;;  %v12_v4 = vld [vmem:[%s1155_s0 + $0x8] sm:$0xff]  ;;  %v15_v6 = vld [vmem:[%s1155_s0 + $0x20] sm:$0xff]  ;;  %v539_v12 = vld [vmem:[%s1156_s1 + $0x90] sm:$0xff]  ;;  %v27_v1 = vlaneseq }
   0x3   :  { %v16_v5 = vld [vmem:[%s1155_s0 + $0x28] sm:$0xff]  ;;  %v537_v7 = vld [vmem:[%s1156_s1 + $0x80] sm:$0xff]  ;;  %v540_v14 = vld [vmem:[%s1156_s1 + $0x98] sm:$0xff] }
   0x4   :  { %v538_v8 = vld [vmem:[%s1156_s1 + $0x88] sm:$0xff]  ;;  %v29_v10 = vld [vmem:[%s1156_s1] sm:$0xff]  ;;  %v31_v15 = vld [vmem:[%s1156_s1 + $0x10] sm:$0xff]  ;;  %v781_v17 = vpack.c.bf16 %v540_v14, %v539_v12  ;;  %v1022_v2 = vand.u32 127, %v27_v1 }
   0x5   :  { %v777_v9 = vpack.c.bf16 %v538_v8, %v537_v7  ;;  %v30_v11 = vld [vmem:[%s1156_s1 + $0x8] sm:$0xff]  ;;  %v32_v16 = vld [vmem:[%s1156_s1 + $0x18] sm:$0xff]  ;;  %v541_v19 = vld [vmem:[%s1156_s1 + $0xa0] sm:$0xff] }
   0x6   :  { %57 = vperm.xlu1 %860, %v14_v3   ;;  %51 = vperm.xlu0 %859, %v12_v4   ;;  %v809_v13 = vpack.c.bf16 %v30_v11, %v29_v10  ;;  %v813_v18 = vpack.c.bf16 %v32_v16, %v31_v15  ;;  %v542_v20 = vld [vmem:[%s1156_s1 + $0xa8] sm:$0xff]  ;;  %v33_v21 = vld [vmem:[%s1156_s1 + $0x20] sm:$0xff]  ;;  %v18_v23 = vld [vmem:[%s1155_s0 + $0x38] sm:$0xff]  ;;  %v1025_v3 = vadd.s32 128, %v1022_v2 }
   0x7   :  { %778 = vmatprep.subr.bf16.mxu1 %v777_v9  ;;  %v34_v22 = vld [vmem:[%s1156_s1 + $0x28] sm:$0xff]  ;;  %v17_v24 = vld [vmem:[%s1155_s0 + $0x30] sm:$0xff]  ;;  %v785_v25 = vpack.c.bf16 %v542_v20, %v541_v19  ;;  %v544_v28 = vld [vmem:[%s1156_s1 + $0xb8] sm:$0xff] }
   0x8   :  { %810 = vmatprep.subr.bf16.mxu0 %v809_v13  ;;  %780 = vmatpush3.bf16.msra.mxu1 %v777_v9  ;;  %v817_v26 = vpack.c.bf16 %v34_v22, %v33_v21  ;;  %v543_v27 = vld [vmem:[%s1156_s1 + $0xb0] sm:$0xff]  ;;  %v36_v30 = vld [vmem:[%s1156_s1 + $0x38] sm:$0xff]  ;;  %v20_v31 = vld [vmem:[%s1155_s0 + $0x48] sm:$0xff] }
   0x9   :  { %812 = vmatpush3.bf16.msra.mxu0 %v809_v13  ;;  %782 = vmatprep.subr.bf16.mxu1 %v781_v17  ;;  %v35_v29 = vld [vmem:[%s1156_s1 + $0x30] sm:$0xff]  ;;  %v19_v32 = vld [vmem:[%s1155_s0 + $0x40] sm:$0xff]  ;;  %v789_v33 = vpack.c.bf16 %v544_v28, %v543_v27  ;;  %v546_v36 = vld [vmem:[%s1156_s1 + $0xc8] sm:$0xff] }
   0xa   :  { %63 = vperm.xlu1 %860, %v16_v5   ;;  %60 = vperm.xlu0 %859, %v15_v6   ;;  %v821_v34 = vpack.c.bf16 %v36_v30, %v35_v29  ;;  %v545_v35 = vld [vmem:[%s1156_s1 + $0xc0] sm:$0xff]  ;;  %v38_v38 = vld [vmem:[%s1156_s1 + $0x48] sm:$0xff]  ;;  %v22_v39 = vld [vmem:[%s1155_s0 + $0x58] sm:$0xff]  ;;  %v862_v6 = vmov 1.0  }
   0xb   :  { %814 = vmatprep.subr.bf16.mxu0 %v813_v18  ;;  %v37_v37 = vld [vmem:[%s1156_s1 + $0x40] sm:$0xff]  ;;  %v21_v40 = vld [vmem:[%s1155_s0 + $0x50] sm:$0xff]  ;;  %v793_v41 = vpack.c.bf16 %v546_v36, %v545_v35  ;;  %v548_v44 = vld [vmem:[%s1156_s1 + $0xd8] sm:$0xff] }
   0xc   :  { %784 = vmatpush3.bf16.msra.mxu1 %v781_v17  ;;  %v825_v42 = vpack.c.bf16 %v38_v38, %v37_v37  ;;  %v547_v43 = vld [vmem:[%s1156_s1 + $0xd0] sm:$0xff]  ;;  %v40_v46 = vld [vmem:[%s1156_s1 + $0x58] sm:$0xff]  ;;  %v24_v47 = vld [vmem:[%s1155_s0 + $0x68] sm:$0xff] }
   0xd   :  { %816 = vmatpush3.bf16.msra.mxu0 %v813_v18  ;;  %786 = vmatprep.subr.bf16.mxu1 %v785_v25  ;;  %v39_v45 = vld [vmem:[%s1156_s1 + $0x50] sm:$0xff]  ;;  %v23_v48 = vld [vmem:[%s1155_s0 + $0x60] sm:$0xff]  ;;  %v797_v49 = vpack.c.bf16 %v548_v44, %v547_v43  ;;  %v550_v52 = vld [vmem:[%s1156_s1 + $0xe8] sm:$0xff] }
   0xe   :  { %69 = vperm.xlu1 %860, %v18_v23   ;;  %66 = vperm.xlu0 %859, %v17_v24   ;;  %v829_v50 = vpack.c.bf16 %v40_v46, %v39_v45  ;;  %v549_v51 = vld [vmem:[%s1156_s1 + $0xe0] sm:$0xff]  ;;  %v42_v54 = vld [vmem:[%s1156_s1 + $0x68] sm:$0xff]  ;;  %v26_v55 = vld [vmem:[%s1155_s0 + $0x78] sm:$0xff] }
   0xf   :  { %818 = vmatprep.subr.bf16.mxu0 %v817_v26  ;;  %v41_v53 = vld [vmem:[%s1156_s1 + $0x60] sm:$0xff]  ;;  %v25_v56 = vld [vmem:[%s1155_s0 + $0x70] sm:$0xff]  ;;  %v801_v57 = vpack.c.bf16 %v550_v52, %v549_v51  ;;  %v552_v60 = vld [vmem:[%s1156_s1 + $0xf8] sm:$0xff] }
  0x10   :  { %788 = vmatpush3.bf16.msra.mxu1 %v785_v25  ;;  %v833_v58 = vpack.c.bf16 %v42_v54, %v41_v53  ;;  %v551_v59 = vld [vmem:[%s1156_s1 + $0xf0] sm:$0xff]  ;;  %v44_v62 = vld [vmem:[%s1156_s1 + $0x78] sm:$0xff] }
  0x11   :  { %820 = vmatpush3.bf16.msra.mxu0 %v817_v26  ;;  %790 = vmatprep.subr.bf16.mxu1 %v789_v33  ;;  %v43_v61 = vld [vmem:[%s1156_s1 + $0x70] sm:$0xff]  ;;  %v805_v63 = vpack.c.bf16 %v552_v60, %v551_v59 }
  0x12   :  { %75 = vperm.xlu1 %860, %v20_v31   ;;  %72 = vperm.xlu0 %859, %v19_v32   ;;  %v837_v0 = vpack.c.bf16 %v44_v62, %v43_v61 }
  0x13   :  { %822 = vmatprep.subr.bf16.mxu0 %v821_v34 }
  0x14   :  { %792 = vmatpush3.bf16.msra.mxu1 %v789_v33 }
  0x15   :  { %824 = vmatpush3.bf16.msra.mxu0 %v821_v34  ;;  %794 = vmatprep.subr.bf16.mxu1 %v793_v41 }
  0x16   :  { %81 = vperm.xlu1 %860, %v22_v39   ;;  %78 = vperm.xlu0 %859, %v21_v40  }
  0x17   :  { %826 = vmatprep.subr.bf16.mxu0 %v825_v42 }
  0x18   :  { %796 = vmatpush3.bf16.msra.mxu1 %v793_v41 }
  0x19   :  { %828 = vmatpush3.bf16.msra.mxu0 %v825_v42  ;;  %798 = vmatprep.subr.bf16.mxu1 %v797_v49 }
  0x1a   :  { %87 = vperm.xlu1 %860, %v24_v47   ;;  %84 = vperm.xlu0 %859, %v23_v48  }
  0x1b   :  { %830 = vmatprep.subr.bf16.mxu0 %v829_v50 }
  0x1c   :  { %800 = vmatpush3.bf16.msra.mxu1 %v797_v49 }
  0x1d   :  { %832 = vmatpush3.bf16.msra.mxu0 %v829_v50  ;;  %802 = vmatprep.subr.bf16.mxu1 %v801_v57 }
  0x1e   :  { %93 = vperm.xlu1 %860, %v26_v55   ;;  %90 = vperm.xlu0 %859, %v25_v56  }
  0x1f   :  { %834 = vmatprep.subr.bf16.mxu0 %v833_v58 }
  0x20   :  { %804 = vmatpush3.bf16.msra.mxu1 %v801_v57 }
  0x21   :  { %836 = vmatpush3.bf16.msra.mxu0 %v833_v58  ;;  %806 = vmatprep.subr.bf16.mxu1 %v805_v63 }
  0x22   :  { %838 = vmatprep.subr.bf16.mxu0 %v837_v0 }
  0x24   :  { %808 = vmatpush3.bf16.msra.mxu1 %v805_v63 }
  0x25   :  { %840 = vmatpush3.bf16.msra.mxu0 %v837_v0 }
  0x81   :  { %v55_v4 = vpop.permute.xlu1 %54  ;;  %v49_v5 = vpop.permute.xlu0 %48 }
  0x82   :  { %vm162_vm0 = vcmp.eq.s32.totalorder %v49_v5, %v1025_v3  ;;  %vm95_vm1 = vcmp.eq.s32.totalorder %v49_v5, %v1022_v2  ;;  %vm97_vm2 = vcmp.eq.s32.totalorder %v55_v4, %v1022_v2  ;;  %vm164_vm3 = vcmp.eq.s32.totalorder %v55_v4, %v1025_v3 }
  0x83   :  { %697 = vmatprep.mubr.msk.f32.mxu1 %vm162_vm0, %v862_v6  ;;  %753 = vmatprep.mubr.msk.f32.mxu0 %vm95_vm1, %v862_v6 }
  0x85   :  { %v58_v7 = vpop.permute.xlu1 %57  ;;  %v52_v8 = vpop.permute.xlu0 %51 }
  0x86   :  { %vm96_vm4 = vcmp.eq.s32.totalorder %v52_v8, %v1022_v2  ;;  %vm163_vm5 = vcmp.eq.s32.totalorder %v52_v8, %v1025_v3  ;;  %vm98_vm6 = vcmp.eq.s32.totalorder %v58_v7, %v1022_v2  ;;  %vm165_vm7 = vcmp.eq.s32.totalorder %v58_v7, %v1025_v3 }
  0x87   :  { %698 = vmatmul.mubr.msk.f32.vlgmr.msra.gmra.mrb[0].mxu1 %vm163_vm5, %v862_v6  ;;  %754 = vmatmul.mubr.msk.f32.vlgmr.msra.gmra.mrb[0].mxu0 %vm96_vm4, %v862_v6 }
  0x88   :  { %700 = vmatprep.mubr.msk.f32.mxu1 %vm164_vm3, %v862_v6  ;;  %756 = vmatprep.mubr.msk.f32.mxu0 %vm97_vm2, %v862_v6 }
  0x89   :  { %v64_v9 = vpop.permute.xlu1 %63  ;;  %v61_v10 = vpop.permute.xlu0 %60 }
  0x8a   :  { %vm99_vm8 = vcmp.eq.s32.totalorder %v61_v10, %v1022_v2  ;;  %vm166_vm9 = vcmp.eq.s32.totalorder %v61_v10, %v1025_v3  ;;  %vm100_vm10 = vcmp.eq.s32.totalorder %v64_v9, %v1022_v2  ;;  %vm167_vm11 = vcmp.eq.s32.totalorder %v64_v9, %v1025_v3 }
  0x8b   :  { %701 = vmatmul.mubr.msk.f32.gmra.mrb[2].mxu1 %vm165_vm7, %v862_v6  ;;  %757 = vmatmul.mubr.msk.f32.gmra.mrb[2].mxu0 %vm98_vm6, %v862_v6 }
  0x8c   :  { %703 = vmatprep.mubr.msk.f32.mxu1 %vm166_vm9, %v862_v6  ;;  %759 = vmatprep.mubr.msk.f32.mxu0 %vm99_vm8, %v862_v6 }
  0x8d   :  { %v70_v11 = vpop.permute.xlu1 %69  ;;  %v67_v12 = vpop.permute.xlu0 %66 }
  0x8e   :  { %vm101_vm12 = vcmp.eq.s32.totalorder %v67_v12, %v1022_v2  ;;  %vm168_vm13 = vcmp.eq.s32.totalorder %v67_v12, %v1025_v3  ;;  %vm102_vm14 = vcmp.eq.s32.totalorder %v70_v11, %v1022_v2  ;;  %vm169_vm15 = vcmp.eq.s32.totalorder %v70_v11, %v1025_v3 }
  0x8f   :  { %704 = vmatmul.mubr.msk.f32.gmra.mrb[4].mxu1 %vm167_vm11, %v862_v6  ;;  %760 = vmatmul.mubr.msk.f32.gmra.mrb[4].mxu0 %vm100_vm10, %v862_v6 }
  0x90   :  { %706 = vmatprep.mubr.msk.f32.mxu1 %vm168_vm13, %v862_v6  ;;  %762 = vmatprep.mubr.msk.f32.mxu0 %vm101_vm12, %v862_v6 }
  0x91   :  { %v76_v13 = vpop.permute.xlu1 %75  ;;  %v73_v14 = vpop.permute.xlu0 %72 }
  0x92   :  { %vm103_vm0 = vcmp.eq.s32.totalorder %v73_v14, %v1022_v2  ;;  %vm170_vm1 = vcmp.eq.s32.totalorder %v73_v14, %v1025_v3  ;;  %vm104_vm2 = vcmp.eq.s32.totalorder %v76_v13, %v1022_v2  ;;  %vm171_vm3 = vcmp.eq.s32.totalorder %v76_v13, %v1025_v3 }
  0x93   :  { %707 = vmatmul.mubr.msk.f32.gmra.mrb[6].mxu1 %vm169_vm15, %v862_v6  ;;  %763 = vmatmul.mubr.msk.f32.gmra.mrb[6].mxu0 %vm102_vm14, %v862_v6 }
  0x94   :  { %709 = vmatprep.mubr.msk.f32.mxu1 %vm170_vm1, %v862_v6  ;;  %765 = vmatprep.mubr.msk.f32.mxu0 %vm103_vm0, %v862_v6  ;;  %vm500_vm0 = vcmask 261120  }
  0x95   :  { %v82_v15 = vpop.permute.xlu1 %81  ;;  %v79_v16 = vpop.permute.xlu0 %78 }
  0x96   :  { %vm105_vm4 = vcmp.eq.s32.totalorder %v79_v16, %v1022_v2  ;;  %vm172_vm5 = vcmp.eq.s32.totalorder %v79_v16, %v1025_v3  ;;  %vm106_vm6 = vcmp.eq.s32.totalorder %v82_v15, %v1022_v2  ;;  %vm173_vm7 = vcmp.eq.s32.totalorder %v82_v15, %v1025_v3 }
  0x97   :  { %710 = vmatmul.mubr.msk.f32.gmra.mrb[8].mxu1 %vm171_vm3, %v862_v6  ;;  %766 = vmatmul.mubr.msk.f32.gmra.mrb[8].mxu0 %vm104_vm2, %v862_v6 }
  0x98   :  { %712 = vmatprep.mubr.msk.f32.mxu1 %vm172_vm5, %v862_v6  ;;  %768 = vmatprep.mubr.msk.f32.mxu0 %vm105_vm4, %v862_v6 }
  0x99   :  { %v88_v17 = vpop.permute.xlu1 %87  ;;  %v85_v18 = vpop.permute.xlu0 %84 }
  0x9a   :  { %vm107_vm8 = vcmp.eq.s32.totalorder %v85_v18, %v1022_v2  ;;  %vm174_vm9 = vcmp.eq.s32.totalorder %v85_v18, %v1025_v3  ;;  %vm108_vm10 = vcmp.eq.s32.totalorder %v88_v17, %v1022_v2  ;;  %vm175_vm11 = vcmp.eq.s32.totalorder %v88_v17, %v1025_v3 }
  0x9b   :  { %713 = vmatmul.mubr.msk.f32.gmra.mrb[10].mxu1 %vm173_vm7, %v862_v6  ;;  %769 = vmatmul.mubr.msk.f32.gmra.mrb[10].mxu0 %vm106_vm6, %v862_v6 }
  0x9c   :  { %715 = vmatprep.mubr.msk.f32.mxu1 %vm174_vm9, %v862_v6  ;;  %771 = vmatprep.mubr.msk.f32.mxu0 %vm107_vm8, %v862_v6 }
  0x9d   :  { %v91_v19 = vpop.permute.xlu0 %90  ;;  %v94_v20 = vpop.permute.xlu1 %93 }
  0x9e   :  { %vm109_vm12 = vcmp.eq.s32.totalorder %v91_v19, %v1022_v2  ;;  %vm176_vm13 = vcmp.eq.s32.totalorder %v91_v19, %v1025_v3  ;;  %vm110_vm14 = vcmp.eq.s32.totalorder %v94_v20, %v1022_v2  ;;  %vm177_vm15 = vcmp.eq.s32.totalorder %v94_v20, %v1025_v3 }
  0x9f   :  { %716 = vmatmul.mubr.msk.f32.gmra.mrb[12].mxu1 %vm175_vm11, %v862_v6  ;;  %772 = vmatmul.mubr.msk.f32.gmra.mrb[12].mxu0 %vm108_vm10, %v862_v6 }
  0xa0   :  { %718 = vmatprep.mubr.msk.f32.mxu1 %vm176_vm13, %v862_v6  ;;  %774 = vmatprep.mubr.msk.f32.mxu0 %vm109_vm12, %v862_v6 }
  0xa3   :  { %719 = vmatmul.mubr.msk.f32.gmra.mrb[14].mxu1 %vm177_vm15, %v862_v6  ;;  %775 = vmatmul.mubr.msk.f32.gmra.mrb[14].mxu0 %vm110_vm14, %v862_v6 }
 0x15a   :  { %v699_v21 = vpop.f32.mrb[0].mxu1  ;;  %v755_v22 = vpop.f32.mrb[0].mxu0 }
 0x15b   :  { %v427_v23 = vadd.f32 %v755_v22, %v699_v21  ;;  %v276_v24 = vpop.f32.mrb[1].mxu1  ;;  %v421_v25 = vpop.f32.mrb[1].mxu0 }
 0x15c   :  { %v422_v26 = vadd.f32 %v421_v25, %v276_v24 }
 0x15d   :  { %502 = vst.msk [vmem:[%s1157_s2 + $0x8] sm:$0xff] %vm500_vm0, %v427_v23 }
 0x15e   :  { %501 = vst.msk [vmem:[%s1157_s2] sm:$0xff] %vm500_vm0, %v422_v26  ;;  %v702_v27 = vpop.f32.mrb[2].mxu1  ;;  %v758_v28 = vpop.f32.mrb[2].mxu0 }
 0x15f   :  { %v437_v29 = vadd.f32 %v758_v28, %v702_v27  ;;  %v286_v30 = vpop.f32.mrb[3].mxu1  ;;  %v431_v31 = vpop.f32.mrb[3].mxu0 }
 0x160   :  { %v432_v32 = vadd.f32 %v431_v31, %v286_v30 }
 0x161   :  { %504 = vst.msk [vmem:[%s1157_s2 + $0x18] sm:$0xff] %vm500_vm0, %v437_v29 }
 0x162   :  { %503 = vst.msk [vmem:[%s1157_s2 + $0x10] sm:$0xff] %vm500_vm0, %v432_v32  ;;  %v705_v33 = vpop.f32.mrb[4].mxu1  ;;  %v761_v34 = vpop.f32.mrb[4].mxu0 }
 0x163   :  { %v447_v35 = vadd.f32 %v761_v34, %v705_v33  ;;  %v296_v36 = vpop.f32.mrb[5].mxu1  ;;  %v441_v37 = vpop.f32.mrb[5].mxu0 }
 0x164   :  { %v442_v38 = vadd.f32 %v441_v37, %v296_v36 }
 0x165   :  { %506 = vst.msk [vmem:[%s1157_s2 + $0x28] sm:$0xff] %vm500_vm0, %v447_v35 }
 0x166   :  { %505 = vst.msk [vmem:[%s1157_s2 + $0x20] sm:$0xff] %vm500_vm0, %v442_v38  ;;  %v708_v39 = vpop.f32.mrb[6].mxu1  ;;  %v764_v40 = vpop.f32.mrb[6].mxu0 }
 0x167   :  { %v457_v41 = vadd.f32 %v764_v40, %v708_v39  ;;  %v306_v42 = vpop.f32.mrb[7].mxu1  ;;  %v451_v43 = vpop.f32.mrb[7].mxu0 }
 0x168   :  { %v452_v44 = vadd.f32 %v451_v43, %v306_v42 }
 0x169   :  { %508 = vst.msk [vmem:[%s1157_s2 + $0x38] sm:$0xff] %vm500_vm0, %v457_v41 }
 0x16a   :  { %507 = vst.msk [vmem:[%s1157_s2 + $0x30] sm:$0xff] %vm500_vm0, %v452_v44  ;;  %v711_v45 = vpop.f32.mrb[8].mxu1  ;;  %v767_v46 = vpop.f32.mrb[8].mxu0 }
 0x16b   :  { %v467_v47 = vadd.f32 %v767_v46, %v711_v45  ;;  %v316_v48 = vpop.f32.mrb[9].mxu1  ;;  %v461_v49 = vpop.f32.mrb[9].mxu0 }
 0x16c   :  { %v462_v50 = vadd.f32 %v461_v49, %v316_v48 }
 0x16d   :  { %510 = vst.msk [vmem:[%s1157_s2 + $0x48] sm:$0xff] %vm500_vm0, %v467_v47 }
 0x16e   :  { %509 = vst.msk [vmem:[%s1157_s2 + $0x40] sm:$0xff] %vm500_vm0, %v462_v50  ;;  %v714_v51 = vpop.f32.mrb[10].mxu1  ;;  %v770_v52 = vpop.f32.mrb[10].mxu0 }
 0x16f   :  { %v477_v53 = vadd.f32 %v770_v52, %v714_v51  ;;  %v326_v54 = vpop.f32.mrb[11].mxu1  ;;  %v471_v55 = vpop.f32.mrb[11].mxu0 }
 0x170   :  { %v472_v56 = vadd.f32 %v471_v55, %v326_v54 }
 0x171   :  { %512 = vst.msk [vmem:[%s1157_s2 + $0x58] sm:$0xff] %vm500_vm0, %v477_v53 }
 0x172   :  { %511 = vst.msk [vmem:[%s1157_s2 + $0x50] sm:$0xff] %vm500_vm0, %v472_v56  ;;  %v717_v57 = vpop.f32.mrb[12].mxu1  ;;  %v773_v58 = vpop.f32.mrb[12].mxu0 }
 0x173   :  { %v487_v59 = vadd.f32 %v773_v58, %v717_v57  ;;  %v336_v60 = vpop.f32.mrb[13].mxu1  ;;  %v481_v61 = vpop.f32.mrb[13].mxu0 }
 0x174   :  { %v482_v62 = vadd.f32 %v481_v61, %v336_v60 }
 0x175   :  { %514 = vst.msk [vmem:[%s1157_s2 + $0x68] sm:$0xff] %vm500_vm0, %v487_v59 }
 0x176   :  { %513 = vst.msk [vmem:[%s1157_s2 + $0x60] sm:$0xff] %vm500_vm0, %v482_v62  ;;  %v720_v63 = vpop.f32.mrb[14].mxu1  ;;  %v776_v0 = vpop.f32.mrb[14].mxu0 }
 0x177   :  { %v497_v1 = vadd.f32 %v776_v0, %v720_v63  ;;  %v346_v2 = vpop.f32.mrb[15].mxu1  ;;  %v491_v3 = vpop.f32.mrb[15].mxu0 }
 0x178   :  { %v492_v4 = vadd.f32 %v491_v3, %v346_v2 }
 0x179   :  { %516 = vst.msk [vmem:[%s1157_s2 + $0x78] sm:$0xff] %vm500_vm0, %v497_v1 }
 0x17a   :  { %515 = vst.msk [vmem:[%s1157_s2 + $0x70] sm:$0xff] %vm500_vm0, %v492_v4 }

// kernel: tpu_custom_call.1
= control target key start
LH: loop header
LB: loop body
LE: loop exit
PB: predicated region body
PF: predicated region fallthrough
CT: control target
= control target key end

     0   :  { %v861_v0 = vmov 0   ;;  %s1155_s0 = inlined_call_operand.vmem [shape: s32[128,1], index: 0, kind: input, shape index: {}]   ;;  %s1156_s1 = inlined_call_operand.vmem [shape: f32[256,32], index: 1, kind: input, shape index: {}]   ;;  %s1157_s2 = inlined_call_operand.vmem [shape: f32[128,32], index: 2, kind: output, shape index: {}]  }
   0x1   :  { %860 = vset.pattern.permute.xlu1 %v861_v0  ;;  %859 = vset.pattern.permute.xlu0 %v861_v0  ;;  %v13_v1 = vld [vmem:[%s1155_s0 + $0x10] sm:$0xff]  ;;  %v11_v2 = vld [vmem:[%s1155_s0] sm:$0xff]  ;;  %v14_v3 = vld [vmem:[%s1155_s0 + $0x18] sm:$0xff] }
   0x2   :  { %54 = vperm.xlu1 %860, %v13_v1   ;;  %48 = vperm.xlu0 %859, %v11_v2   ;;  %v12_v4 = vld [vmem:[%s1155_s0 + $0x8] sm:$0xff]  ;;  %v15_v6 = vld [vmem:[%s1155_s0 + $0x20] sm:$0xff]  ;;  %v539_v12 = vld [vmem:[%s1156_s1 + $0x90] sm:$0xff]  ;;  %v27_v1 = vlaneseq }
   0x3   :  { %v16_v5 = vld [vmem:[%s1155_s0 + $0x28] sm:$0xff]  ;;  %v537_v7 = vld [vmem:[%s1156_s1 + $0x80] sm:$0xff]  ;;  %v540_v14 = vld [vmem:[%s1156_s1 + $0x98] sm:$0xff] }
   0x4   :  { %v538_v8 = vld [vmem:[%s1156_s1 + $0x88] sm:$0xff]  ;;  %v29_v10 = vld [vmem:[%s1156_s1] sm:$0xff]  ;;  %v31_v15 = vld [vmem:[%s1156_s1 + $0x10] sm:$0xff]  ;;  %v781_v17 = vpack.c.bf16 %v540_v14, %v539_v12  ;;  %v1022_v2 = vand.u32 127, %v27_v1 }
   0x5   :  { %v777_v9 = vpack.c.bf16 %v538_v8, %v537_v7  ;;  %v30_v11 = vld [vmem:[%s1156_s1 + $0x8] sm:$0xff]  ;;  %v32_v16 = vld [vmem:[%s1156_s1 + $0x18] sm:$0xff]  ;;  %v541_v19 = vld [vmem:[%s1156_s1 + $0xa0] sm:$0xff] }
   0x6   :  { %57 = vperm.xlu1 %860, %v14_v3   ;;  %51 = vperm.xlu0 %859, %v12_v4   ;;  %v809_v13 = vpack.c.bf16 %v30_v11, %v29_v10  ;;  %v813_v18 = vpack.c.bf16 %v32_v16, %v31_v15  ;;  %v542_v20 = vld [vmem:[%s1156_s1 + $0xa8] sm:$0xff]  ;;  %v33_v21 = vld [vmem:[%s1156_s1 + $0x20] sm:$0xff]  ;;  %v18_v23 = vld [vmem:[%s1155_s0 + $0x38] sm:$0xff]  ;;  %v1025_v3 = vadd.s32 128, %v1022_v2 }
   0x7   :  { %778 = vmatprep.subr.bf16.mxu1 %v777_v9  ;;  %v34_v22 = vld [vmem:[%s1156_s1 + $0x28] sm:$0xff]  ;;  %v17_v24 = vld [vmem:[%s1155_s0 + $0x30] sm:$0xff]  ;;  %v785_v25 = vpack.c.bf16 %v542_v20, %v541_v19  ;;  %v544_v28 = vld [vmem:[%s1156_s1 + $0xb8] sm:$0xff] }
   0x8   :  { %810 = vmatprep.subr.bf16.mxu0 %v809_v13  ;;  %780 = vmatpush3.bf16.msra.mxu1 %v777_v9  ;;  %v817_v26 = vpack.c.bf16 %v34_v22, %v33_v21  ;;  %v543_v27 = vld [vmem:[%s1156_s1 + $0xb0] sm:$0xff]  ;;  %v36_v30 = vld [vmem:[%s1156_s1 + $0x38] sm:$0xff]  ;;  %v20_v31 = vld [vmem:[%s1155_s0 + $0x48] sm:$0xff] }
   0x9   :  { %812 = vmatpush3.bf16.msra.mxu0 %v809_v13  ;;  %782 = vmatprep.subr.bf16.mxu1 %v781_v17  ;;  %v35_v29 = vld [vmem:[%s1156_s1 + $0x30] sm:$0xff]  ;;  %v19_v32 = vld [vmem:[%s1155_s0 + $0x40] sm:$0xff]  ;;  %v789_v33 = vpack.c.bf16 %v544_v28, %v543_v27  ;;  %v546_v36 = vld [vmem:[%s1156_s1 + $0xc8] sm:$0xff] }
   0xa   :  { %63 = vperm.xlu1 %860, %v16_v5   ;;  %60 = vperm.xlu0 %859, %v15_v6   ;;  %v821_v34 = vpack.c.bf16 %v36_v30, %v35_v29  ;;  %v545_v35 = vld [vmem:[%s1156_s1 + $0xc0] sm:$0xff]  ;;  %v38_v38 = vld [vmem:[%s1156_s1 + $0x48] sm:$0xff]  ;;  %v22_v39 = vld [vmem:[%s1155_s0 + $0x58] sm:$0xff]  ;;  %v862_v6 = vmov 1.0  }
   0xb   :  { %814 = vmatprep.subr.bf16.mxu0 %v813_v18  ;;  %v37_v37 = vld [vmem:[%s1156_s1 + $0x40] sm:$0xff]  ;;  %v21_v40 = vld [vmem:[%s1155_s0 + $0x50] sm:$0xff]  ;;  %v793_v41 = vpack.c.bf16 %v546_v36, %v545_v35  ;;  %v548_v44 = vld [vmem:[%s1156_s1 + $0xd8] sm:$0xff] }
   0xc   :  { %784 = vmatpush3.bf16.msra.mxu1 %v781_v17  ;;  %v825_v42 = vpack.c.bf16 %v38_v38, %v37_v37  ;;  %v547_v43 = vld [vmem:[%s1156_s1 + $0xd0] sm:$0xff]  ;;  %v40_v46 = vld [vmem:[%s1156_s1 + $0x58] sm:$0xff]  ;;  %v24_v47 = vld [vmem:[%s1155_s0 + $0x68] sm:$0xff] }
   0xd   :  { %816 = vmatpush3.bf16.msra.mxu0 %v813_v18  ;;  %786 = vmatprep.subr.bf16.mxu1 %v785_v25  ;;  %v39_v45 = vld [vmem:[%s1156_s1 + $0x50] sm:$0xff]  ;;  %v23_v48 = vld [vmem:[%s1155_s0 + $0x60] sm:$0xff]  ;;  %v797_v49 = vpack.c.bf16 %v548_v44, %v547_v43  ;;  %v550_v52 = vld [vmem:[%s1156_s1 + $0xe8] sm:$0xff] }
   0xe   :  { %69 = vperm.xlu1 %860, %v18_v23   ;;  %66 = vperm.xlu0 %859, %v17_v24   ;;  %v829_v50 = vpack.c.bf16 %v40_v46, %v39_v45  ;;  %v549_v51 = vld [vmem:[%s1156_s1 + $0xe0] sm:$0xff]  ;;  %v42_v54 = vld [vmem:[%s1156_s1 + $0x68] sm:$0xff]  ;;  %v26_v55 = vld [vmem:[%s1155_s0 + $0x78] sm:$0xff] }
   0xf   :  { %818 = vmatprep.subr.bf16.mxu0 %v817_v26  ;;  %v41_v53 = vld [vmem:[%s1156_s1 + $0x60] sm:$0xff]  ;;  %v25_v56 = vld [vmem:[%s1155_s0 + $0x70] sm:$0xff]  ;;  %v801_v57 = vpack.c.bf16 %v550_v52, %v549_v51  ;;  %v552_v60 = vld [vmem:[%s1156_s1 + $0xf8] sm:$0xff] }
  0x10   :  { %788 = vmatpush3.bf16.msra.mxu1 %v785_v25  ;;  %v833_v58 = vpack.c.bf16 %v42_v54, %v41_v53  ;;  %v551_v59 = vld [vmem:[%s1156_s1 + $0xf0] sm:$0xff]  ;;  %v44_v62 = vld [vmem:[%s1156_s1 + $0x78] sm:$0xff] }
  0x11   :  { %820 = vmatpush3.bf16.msra.mxu0 %v817_v26  ;;  %790 = vmatprep.subr.bf16.mxu1 %v789_v33  ;;  %v43_v61 = vld [vmem:[%s1156_s1 + $0x70] sm:$0xff]  ;;  %v805_v63 = vpack.c.bf16 %v552_v60, %v551_v59 }
  0x12   :  { %75 = vperm.xlu1 %860, %v20_v31   ;;  %72 = vperm.xlu0 %859, %v19_v32   ;;  %v837_v0 = vpack.c.bf16 %v44_v62, %v43_v61 }
  0x13   :  { %822 = vmatprep.subr.bf16.mxu0 %v821_v34 }
  0x14   :  { %792 = vmatpush3.bf16.msra.mxu1 %v789_v33 }
  0x15   :  { %824 = vmatpush3.bf16.msra.mxu0 %v821_v34  ;;  %794 = vmatprep.subr.bf16.mxu1 %v793_v41 }
  0x16   :  { %81 = vperm.xlu1 %860, %v22_v39   ;;  %78 = vperm.xlu0 %859, %v21_v40  }
  0x17   :  { %826 = vmatprep.subr.bf16.mxu0 %v825_v42 }
  0x18   :  { %796 = vmatpush3.bf16.msra.mxu1 %v793_v41 }
  0x19   :  { %828 = vmatpush3.bf16.msra.mxu0 %v825_v42  ;;  %798 = vmatprep.subr.bf16.mxu1 %v797_v49 }
  0x1a   :  { %87 = vperm.xlu1 %860, %v24_v47   ;;  %84 = vperm.xlu0 %859, %v23_v48  }
  0x1b   :  { %830 = vmatprep.subr.bf16.mxu0 %v829_v50 }
  0x1c   :  { %800 = vmatpush3.bf16.msra.mxu1 %v797_v49 }
  0x1d   :  { %832 = vmatpush3.bf16.msra.mxu0 %v829_v50  ;;  %802 = vmatprep.subr.bf16.mxu1 %v801_v57 }
  0x1e   :  { %93 = vperm.xlu1 %860, %v26_v55   ;;  %90 = vperm.xlu0 %859, %v25_v56  }
  0x1f   :  { %834 = vmatprep.subr.bf16.mxu0 %v833_v58 }
  0x20   :  { %804 = vmatpush3.bf16.msra.mxu1 %v801_v57 }
  0x21   :  { %836 = vmatpush3.bf16.msra.mxu0 %v833_v58  ;;  %806 = vmatprep.subr.bf16.mxu1 %v805_v63 }
  0x22   :  { %838 = vmatprep.subr.bf16.mxu0 %v837_v0 }
  0x24   :  { %808 = vmatpush3.bf16.msra.mxu1 %v805_v63 }
  0x25   :  { %840 = vmatpush3.bf16.msra.mxu0 %v837_v0 }
  0x81   :  { %v55_v4 = vpop.permute.xlu1 %54  ;;  %v49_v5 = vpop.permute.xlu0 %48 }
  0x82   :  { %vm162_vm0 = vcmp.eq.s32.totalorder %v49_v5, %v1025_v3  ;;  %vm95_vm1 = vcmp.eq.s32.totalorder %v49_v5, %v1022_v2  ;;  %vm97_vm2 = vcmp.eq.s32.totalorder %v55_v4, %v1022_v2  ;;  %vm164_vm3 = vcmp.eq.s32.totalorder %v55_v4, %v1025_v3 }
  0x83   :  { %697 = vmatprep.mubr.msk.f32.mxu1 %vm162_vm0, %v862_v6  ;;  %753 = vmatprep.mubr.msk.f32.mxu0 %vm95_vm1, %v862_v6 }
  0x85   :  { %v58_v7 = vpop.permute.xlu1 %57  ;;  %v52_v8 = vpop.permute.xlu0 %51 }
  0x86   :  { %vm96_vm4 = vcmp.eq.s32.totalorder %v52_v8, %v1022_v2  ;;  %vm163_vm5 = vcmp.eq.s32.totalorder %v52_v8, %v1025_v3  ;;  %vm98_vm6 = vcmp.eq.s32.totalorder %v58_v7, %v1022_v2  ;;  %vm165_vm7 = vcmp.eq.s32.totalorder %v58_v7, %v1025_v3 }
  0x87   :  { %698 = vmatmul.mubr.msk.f32.vlgmr.msra.gmra.mrb[0].mxu1 %vm163_vm5, %v862_v6  ;;  %754 = vmatmul.mubr.msk.f32.vlgmr.msra.gmra.mrb[0].mxu0 %vm96_vm4, %v862_v6 }
  0x88   :  { %700 = vmatprep.mubr.msk.f32.mxu1 %vm164_vm3, %v862_v6  ;;  %756 = vmatprep.mubr.msk.f32.mxu0 %vm97_vm2, %v862_v6 }
  0x89   :  { %v64_v9 = vpop.permute.xlu1 %63  ;;  %v61_v10 = vpop.permute.xlu0 %60 }
  0x8a   :  { %vm99_vm8 = vcmp.eq.s32.totalorder %v61_v10, %v1022_v2  ;;  %vm166_vm9 = vcmp.eq.s32.totalorder %v61_v10, %v1025_v3  ;;  %vm100_vm10 = vcmp.eq.s32.totalorder %v64_v9, %v1022_v2  ;;  %vm167_vm11 = vcmp.eq.s32.totalorder %v64_v9, %v1025_v3 }
  0x8b   :  { %701 = vmatmul.mubr.msk.f32.gmra.mrb[2].mxu1 %vm165_vm7, %v862_v6  ;;  %757 = vmatmul.mubr.msk.f32.gmra.mrb[2].mxu0 %vm98_vm6, %v862_v6 }
  0x8c   :  { %703 = vmatprep.mubr.msk.f32.mxu1 %vm166_vm9, %v862_v6  ;;  %759 = vmatprep.mubr.msk.f32.mxu0 %vm99_vm8, %v862_v6 }
  0x8d   :  { %v70_v11 = vpop.permute.xlu1 %69  ;;  %v67_v12 = vpop.permute.xlu0 %66 }
  0x8e   :  { %vm101_vm12 = vcmp.eq.s32.totalorder %v67_v12, %v1022_v2  ;;  %vm168_vm13 = vcmp.eq.s32.totalorder %v67_v12, %v1025_v3  ;;  %vm102_vm14 = vcmp.eq.s32.totalorder %v70_v11, %v1022_v2  ;;  %vm169_vm15 = vcmp.eq.s32.totalorder %v70_v11, %v1025_v3 }
  0x8f   :  { %704 = vmatmul.mubr.msk.f32.gmra.mrb[4].mxu1 %vm167_vm11, %v862_v6  ;;  %760 = vmatmul.mubr.msk.f32.gmra.mrb[4].mxu0 %vm100_vm10, %v862_v6 }
  0x90   :  { %706 = vmatprep.mubr.msk.f32.mxu1 %vm168_vm13, %v862_v6  ;;  %762 = vmatprep.mubr.msk.f32.mxu0 %vm101_vm12, %v862_v6 }
  0x91   :  { %v76_v13 = vpop.permute.xlu1 %75  ;;  %v73_v14 = vpop.permute.xlu0 %72 }
  0x92   :  { %vm103_vm0 = vcmp.eq.s32.totalorder %v73_v14, %v1022_v2  ;;  %vm170_vm1 = vcmp.eq.s32.totalorder %v73_v14, %v1025_v3  ;;  %vm104_vm2 = vcmp.eq.s32.totalorder %v76_v13, %v1022_v2  ;;  %vm171_vm3 = vcmp.eq.s32.totalorder %v76_v13, %v1025_v3 }
  0x93   :  { %707 = vmatmul.mubr.msk.f32.gmra.mrb[6].mxu1 %vm169_vm15, %v862_v6  ;;  %763 = vmatmul.mubr.msk.f32.gmra.mrb[6].mxu0 %vm102_vm14, %v862_v6 }
  0x94   :  { %709 = vmatprep.mubr.msk.f32.mxu1 %vm170_vm1, %v862_v6  ;;  %765 = vmatprep.mubr.msk.f32.mxu0 %vm103_vm0, %v862_v6  ;;  %vm500_vm0 = vcmask 261120  }
  0x95   :  { %v82_v15 = vpop.permute.xlu1 %81  ;;  %v79_v16 = vpop.permute.xlu0 %78 }
  0x96   :  { %vm105_vm4 = vcmp.eq.s32.totalorder %v79_v16, %v1022_v2  ;;  %vm172_vm5 = vcmp.eq.s32.totalorder %v79_v16, %v1025_v3  ;;  %vm106_vm6 = vcmp.eq.s32.totalorder %v82_v15, %v1022_v2  ;;  %vm173_vm7 = vcmp.eq.s32.totalorder %v82_v15, %v1025_v3 }
  0x97   :  { %710 = vmatmul.mubr.msk.f32.gmra.mrb[8].mxu1 %vm171_vm3, %v862_v6  ;;  %766 = vmatmul.mubr.msk.f32.gmra.mrb[8].mxu0 %vm104_vm2, %v862_v6 }
  0x98   :  { %712 = vmatprep.mubr.msk.f32.mxu1 %vm172_vm5, %v862_v6  ;;  %768 = vmatprep.mubr.msk.f32.mxu0 %vm105_vm4, %v862_v6 }
  0x99   :  { %v88_v17 = vpop.permute.xlu1 %87  ;;  %v85_v18 = vpop.permute.xlu0 %84 }
  0x9a   :  { %vm107_vm8 = vcmp.eq.s32.totalorder %v85_v18, %v1022_v2  ;;  %vm174_vm9 = vcmp.eq.s32.totalorder %v85_v18, %v1025_v3  ;;  %vm108_vm10 = vcmp.eq.s32.totalorder %v88_v17, %v1022_v2  ;;  %vm175_vm11 = vcmp.eq.s32.totalorder %v88_v17, %v1025_v3 }
  0x9b   :  { %713 = vmatmul.mubr.msk.f32.gmra.mrb[10].mxu1 %vm173_vm7, %v862_v6  ;;  %769 = vmatmul.mubr.msk.f32.gmra.mrb[10].mxu0 %vm106_vm6, %v862_v6 }
  0x9c   :  { %715 = vmatprep.mubr.msk.f32.mxu1 %vm174_vm9, %v862_v6  ;;  %771 = vmatprep.mubr.msk.f32.mxu0 %vm107_vm8, %v862_v6 }
  0x9d   :  { %v91_v19 = vpop.permute.xlu0 %90  ;;  %v94_v20 = vpop.permute.xlu1 %93 }
  0x9e   :  { %vm109_vm12 = vcmp.eq.s32.totalorder %v91_v19, %v1022_v2  ;;  %vm176_vm13 = vcmp.eq.s32.totalorder %v91_v19, %v1025_v3  ;;  %vm110_vm14 = vcmp.eq.s32.totalorder %v94_v20, %v1022_v2  ;;  %vm177_vm15 = vcmp.eq.s32.totalorder %v94_v20, %v1025_v3 }
  0x9f   :  { %716 = vmatmul.mubr.msk.f32.gmra.mrb[12].mxu1 %vm175_vm11, %v862_v6  ;;  %772 = vmatmul.mubr.msk.f32.gmra.mrb[12].mxu0 %vm108_vm10, %v862_v6 }
  0xa0   :  { %718 = vmatprep.mubr.msk.f32.mxu1 %vm176_vm13, %v862_v6  ;;  %774 = vmatprep.mubr.msk.f32.mxu0 %vm109_vm12, %v862_v6 }
  0xa3   :  { %719 = vmatmul.mubr.msk.f32.gmra.mrb[14].mxu1 %vm177_vm15, %v862_v6  ;;  %775 = vmatmul.mubr.msk.f32.gmra.mrb[14].mxu0 %vm110_vm14, %v862_v6 }
 0x15a   :  { %v699_v21 = vpop.f32.mrb[0].mxu1  ;;  %v755_v22 = vpop.f32.mrb[0].mxu0 }
 0x15b   :  { %v427_v23 = vadd.f32 %v755_v22, %v699_v21  ;;  %v276_v24 = vpop.f32.mrb[1].mxu1  ;;  %v421_v25 = vpop.f32.mrb[1].mxu0 }
 0x15c   :  { %v422_v26 = vadd.f32 %v421_v25, %v276_v24 }
 0x15d   :  { %502 = vst.msk [vmem:[%s1157_s2 + $0x8] sm:$0xff] %vm500_vm0, %v427_v23 }
 0x15e   :  { %501 = vst.msk [vmem:[%s1157_s2] sm:$0xff] %vm500_vm0, %v422_v26  ;;  %v702_v27 = vpop.f32.mrb[2].mxu1  ;;  %v758_v28 = vpop.f32.mrb[2].mxu0 }
 0x15f   :  { %v437_v29 = vadd.f32 %v758_v28, %v702_v27  ;;  %v286_v30 = vpop.f32.mrb[3].mxu1  ;;  %v431_v31 = vpop.f32.mrb[3].mxu0 }
 0x160   :  { %v432_v32 = vadd.f32 %v431_v31, %v286_v30 }
 0x161   :  { %504 = vst.msk [vmem:[%s1157_s2 + $0x18] sm:$0xff] %vm500_vm0, %v437_v29 }
 0x162   :  { %503 = vst.msk [vmem:[%s1157_s2 + $0x10] sm:$0xff] %vm500_vm0, %v432_v32  ;;  %v705_v33 = vpop.f32.mrb[4].mxu1  ;;  %v761_v34 = vpop.f32.mrb[4].mxu0 }
 0x163   :  { %v447_v35 = vadd.f32 %v761_v34, %v705_v33  ;;  %v296_v36 = vpop.f32.mrb[5].mxu1  ;;  %v441_v37 = vpop.f32.mrb[5].mxu0 }
 0x164   :  { %v442_v38 = vadd.f32 %v441_v37, %v296_v36 }
 0x165   :  { %506 = vst.msk [vmem:[%s1157_s2 + $0x28] sm:$0xff] %vm500_vm0, %v447_v35 }
 0x166   :  { %505 = vst.msk [vmem:[%s1157_s2 + $0x20] sm:$0xff] %vm500_vm0, %v442_v38  ;;  %v708_v39 = vpop.f32.mrb[6].mxu1  ;;  %v764_v40 = vpop.f32.mrb[6].mxu0 }
 0x167   :  { %v457_v41 = vadd.f32 %v764_v40, %v708_v39  ;;  %v306_v42 = vpop.f32.mrb[7].mxu1  ;;  %v451_v43 = vpop.f32.mrb[7].mxu0 }
 0x168   :  { %v452_v44 = vadd.f32 %v451_v43, %v306_v42 }
 0x169   :  { %508 = vst.msk [vmem:[%s1157_s2 + $0x38] sm:$0xff] %vm500_vm0, %v457_v41 }
 0x16a   :  { %507 = vst.msk [vmem:[%s1157_s2 + $0x30] sm:$0xff] %vm500_vm0, %v452_v44  ;;  %v711_v45 = vpop.f32.mrb[8].mxu1  ;;  %v767_v46 = vpop.f32.mrb[8].mxu0 }
 0x16b   :  { %v467_v47 = vadd.f32 %v767_v46, %v711_v45  ;;  %v316_v48 = vpop.f32.mrb[9].mxu1  ;;  %v461_v49 = vpop.f32.mrb[9].mxu0 }
 0x16c   :  { %v462_v50 = vadd.f32 %v461_v49, %v316_v48 }
 0x16d   :  { %510 = vst.msk [vmem:[%s1157_s2 + $0x48] sm:$0xff] %vm500_vm0, %v467_v47 }
 0x16e   :  { %509 = vst.msk [vmem:[%s1157_s2 + $0x40] sm:$0xff] %vm500_vm0, %v462_v50  ;;  %v714_v51 = vpop.f32.mrb[10].mxu1  ;;  %v770_v52 = vpop.f32.mrb[10].mxu0 }
 0x16f   :  { %v477_v53 = vadd.f32 %v770_v52, %v714_v51  ;;  %v326_v54 = vpop.f32.mrb[11].mxu1  ;;  %v471_v55 = vpop.f32.mrb[11].mxu0 }
 0x170   :  { %v472_v56 = vadd.f32 %v471_v55, %v326_v54 }
 0x171   :  { %512 = vst.msk [vmem:[%s1157_s2 + $0x58] sm:$0xff] %vm500_vm0, %v477_v53 }
 0x172   :  { %511 = vst.msk [vmem:[%s1157_s2 + $0x50] sm:$0xff] %vm500_vm0, %v472_v56  ;;  %v717_v57 = vpop.f32.mrb[12].mxu1  ;;  %v773_v58 = vpop.f32.mrb[12].mxu0 }
 0x173   :  { %v487_v59 = vadd.f32 %v773_v58, %v717_v57  ;;  %v336_v60 = vpop.f32.mrb[13].mxu1  ;;  %v481_v61 = vpop.f32.mrb[13].mxu0 }
 0x174   :  { %v482_v62 = vadd.f32 %v481_v61, %v336_v60 }
 0x175   :  { %514 = vst.msk [vmem:[%s1157_s2 + $0x68] sm:$0xff] %vm500_vm0, %v487_v59 }
 0x176   :  { %513 = vst.msk [vmem:[%s1157_s2 + $0x60] sm:$0xff] %vm500_vm0, %v482_v62  ;;  %v720_v63 = vpop.f32.mrb[14].mxu1  ;;  %v776_v0 = vpop.f32.mrb[14].mxu0 }
 0x177   :  { %v497_v1 = vadd.f32 %v776_v0, %v720_v63  ;;  %v346_v2 = vpop.f32.mrb[15].mxu1  ;;  %v491_v3 = vpop.f32.mrb[15].mxu0 }
 0x178   :  { %v492_v4 = vadd.f32 %v491_v3, %v346_v2 }
 0x179   :  { %516 = vst.msk [vmem:[%s1157_s2 + $0x78] sm:$0xff] %vm500_vm0, %v497_v1 }
 0x17a   :  { %515 = vst.msk [vmem:[%s1157_s2 + $0x70] sm:$0xff] %vm500_vm0, %v492_v4 }

</bundles_post_ra>
